<compile_context>
chip_gen: v7x
topology: tpu7x:2x2x1
jax: 0.10.0
libtpu: 0.0.40
codegen_flags: <defaults>
</compile_context>

<pallas_src>
import jax
import jax.numpy as jnp
from jax.experimental import pallas as pl
from jax.experimental.pallas import tpu as pltpu


def _softargmax_kernel(x_ref, m_ref, o_ref):
    # x_ref: (Rt, HW) heatmap rows      m_ref: (HW, 3) = [ones | xw | yw]
    # o_ref: (Rt, 2)  -> [x_coord, y_coord] per row
    x = x_ref[...].astype(jnp.float32)                     # (Rt, HW)
    row_max = jnp.max(x, axis=-1, keepdims=True)           # (Rt, 1)
    e = jnp.exp(x - row_max)                               # (Rt, HW)

    # One MXU matmul yields [sum(e), sum(e*xw), sum(e*yw)] per row.
    s = jnp.dot(e, m_ref[...], preferred_element_type=jnp.float32)  # (Rt, 3)

    denom = s[:, 0:1]                                      # (Rt, 1)
    coords = s[:, 1:3] / denom                             # (Rt, 2)
    o_ref[...] = coords.astype(o_ref.dtype)


def soft_argmax_2d(x, *, max_block_bytes=2 * 1024 * 1024):
    """x: (B, J, H, W) -> (B, J, 2), matching SoftArgMax2d.forward."""
    B, J, H, W = x.shape
    R, HW = B * J, H * W
    xf = x.reshape(R, HW)

    # torch.linspace(0, 1, N) == arange(N) / (N - 1)   (== [0.] when N == 1)
    w_lin = jnp.arange(W, dtype=jnp.float32) / float(max(W - 1, 1))
    h_lin = jnp.arange(H, dtype=jnp.float32) / float(max(H - 1, 1))
    m = jnp.stack(
        [
            jnp.ones((HW,), jnp.float32),   # -> softmax denominator
            jnp.tile(w_lin, H),             # flat index h*W+w -> w/(W-1)
            jnp.repeat(h_lin, W),           # flat index h*W+w -> h/(H-1)
        ],
        axis=1,
    )                                       # (HW, 3)

    # Largest row tile that keeps the f32 input block around max_block_bytes.
    rt = max_block_bytes // (HW * 4)
    if rt >= R:
        rt = R                              # whole problem in one block
    else:
        rt = max(8, (rt // 8) * 8)          # (8, 128) sublane alignment
    grid = (pl.cdiv(R, rt),)

    out = pl.pallas_call(
        _softargmax_kernel,
        out_shape=jax.ShapeDtypeStruct((R, 2), x.dtype),
        grid_spec=pltpu.PrefetchScalarGridSpec(
            num_scalar_prefetch=0,
            grid=grid,
            in_specs=[
                pl.BlockSpec((rt, HW), lambda i: (i, 0)),
                pl.BlockSpec((HW, 3), lambda i: (0, 0)),
            ],
            out_specs=pl.BlockSpec((rt, 2), lambda i: (i, 0)),
        ),
        compiler_params=pltpu.CompilerParams(
            dimension_semantics=("parallel",),
        ),
    )(xf, m)

    return out.reshape(B, J, 2)


def _reference(x):
    """Pure-JAX reference mirroring the PyTorch forward exactly."""
    B, J, H, W = x.shape
    x_sp = jnp.linspace(0.0, 1.0, W)
    y_sp = jnp.linspace(0.0, 1.0, H)
    p = jax.nn.softmax(x.reshape(B, J, -1), axis=2).reshape(B, J, H, W)
    x_coord = jnp.sum(jnp.sum(p, axis=2) * x_sp, axis=2)
    y_coord = jnp.sum(jnp.sum(p, axis=3) * y_sp, axis=2)
    return jnp.stack([x_coord, y_coord], axis=2)


if __name__ == "__main__":
    key = jax.random.PRNGKey(0)
    B, J, H, W = 2, 4, 16, 16
    x = jax.random.normal(key, (B, J, H, W), dtype=jnp.float32)

    out = soft_argmax_2d(x)
    out = jax.block_until_ready(out)

    ref = _reference(x)
    assert out.shape == (B, J, 2)
    assert jnp.allclose(out, ref, atol=1e-5, rtol=1e-5), (
        f"max abs err {jnp.max(jnp.abs(out - ref))}"
    )
    print("KERNEL_OK")
</pallas_src>

<mosaic_0001>
module attributes {stable_mosaic.version = 11 : i64} {
  func.func @_softargmax_kernel(%arg0: i32, %arg1: memref<8x256xf32, #tpu.memory_space<vmem>>, %arg2: memref<256x3xf32, #tpu.memory_space<vmem>>, %arg3: memref<8x2xf32, #tpu.memory_space<vmem>>) attributes {dimension_semantics = [#tpu.dimension_semantics<parallel>], iteration_bounds = array<i64: 1>, scalar_prefetch = 0 : i64, scratch_operands = 0 : i64, tpu.core_type = #tpu.core_type<tc>, window_params = [{transform_indices = @transform_0, window_bounds = array<i64: 8, 256>}, {pipeline_mode = #tpu.pipeline_mode<synchronous>, transform_indices = @transform_1, window_bounds = array<i64: 256, 3>}, {transform_indices = @transform_2, window_bounds = array<i64: 8, 2>}]} {
    %c0 = arith.constant 0 : index
    %c0_0 = arith.constant 0 : index
    %0 = vector.load %arg1[%c0, %c0_0] : memref<8x256xf32, #tpu.memory_space<vmem>>, vector<8x256xf32>
    %cst = arith.constant dense<0xFF800000> : vector<8xf32>
    %1 = vector.multi_reduction <maximumf>, %0, %cst [1] : vector<8x256xf32> to vector<8xf32>
    %2 = vector.shape_cast %1 : vector<8xf32> to vector<8x1xf32>
    %3 = vector.broadcast %2 : vector<8x1xf32> to vector<8x256xf32>
    %4 = arith.subf %0, %3 : vector<8x256xf32>
    %5 = math.exp %4 : vector<8x256xf32>
    %c0_1 = arith.constant 0 : index
    %c0_2 = arith.constant 0 : index
    %6 = vector.load %arg2[%c0_1, %c0_2] : memref<256x3xf32, #tpu.memory_space<vmem>>, vector<256x3xf32>
    %cst_3 = arith.constant dense<0.000000e+00> : vector<8x3xf32>
    %7 = tpu.matmul %5, %6, %cst_3 {dimension_numbers = #tpu.dot_dimension_numbers<[1], [0], [0], [1], [0, 0, 1, 1], [], []>} : vector<8x256xf32>, vector<256x3xf32>, vector<8x3xf32> -> vector<8x3xf32>
    %8 = vector.extract_strided_slice %7 {offsets = [0, 0], sizes = [8, 1], strides = [1, 1]} : vector<8x3xf32> to vector<8x1xf32>
    %9 = vector.extract_strided_slice %7 {offsets = [0, 1], sizes = [8, 2], strides = [1, 1]} : vector<8x3xf32> to vector<8x2xf32>
    %10 = vector.broadcast %8 : vector<8x1xf32> to vector<8x2xf32>
    %11 = arith.divf %9, %10 : vector<8x2xf32>
    %c0_4 = arith.constant 0 : index
    %c0_5 = arith.constant 0 : index
    %12 = vector.load %arg3[%c0_4, %c0_5] : memref<8x2xf32, #tpu.memory_space<vmem>>, vector<8x2xf32>
    tpu.vector_store %arg3[%c0_4, %c0_5], %11 {strides = array<i32>} : memref<8x2xf32, #tpu.memory_space<vmem>>, vector<8x2xf32>,
    return
  }
  func.func @transform_0(%arg0: i32) -> (i32, i32) {
    %c0_i32 = arith.constant 0 : i32
    %c0_i32_0 = arith.constant 0 : i32
    return %arg0, %c0_i32 : i32, i32
  }
  func.func @transform_1(%arg0: i32) -> (i32, i32) {
    %c0_i32 = arith.constant 0 : i32
    %c0_i32_0 = arith.constant 0 : i32
    %c0_i32_1 = arith.constant 0 : i32
    return %c0_i32, %c0_i32_0 : i32, i32
  }
  func.func @transform_2(%arg0: i32) -> (i32, i32) {
    %c0_i32 = arith.constant 0 : i32
    %c0_i32_0 = arith.constant 0 : i32
    return %arg0, %c0_i32 : i32, i32
  }
}

</mosaic_0001>

<bundles_post_ra>
// kernel: tpu_custom_call.1
= control target key start
LH: loop header
LB: loop body
LE: loop exit
PB: predicated region body
PF: predicated region fallthrough
CT: control target
= control target key end

     0   :  { %v217_v58 = vmov 0   ;;  %vm135_vm0 = vcmask 15360   ;;  %s347_s0 = inlined_call_operand.vmem [shape: f32[8,256], index: 0, kind: input, shape index: {}]   ;;  %s348_s1 = inlined_call_operand.vmem [shape: f32[256,3], index: 1, kind: input, shape index: {}]   ;;  %s349_s2 = inlined_call_operand.vmem [shape: f32[8,2], index: 2, kind: output, shape index: {}]  }
   0x1   :  { %v237_v0 = vld [vmem:[%s347_s0] sm:$0xff]  ;;  %v242_v1 = vld [vmem:[%s347_s0 + $0x8] sm:$0xff]  ;;  %v40_v9 = vld [vmem:[%s348_s1 + $0x90] sm:$0xff]  ;;  %210 = vset.pattern.permute.xlu0 %v217_v58 }
   0x2   :  { %v38_v2 = vld [vmem:[%s348_s1 + $0x80] sm:$0xff]  ;;  %v13_v3 = vmax.f32 %v237_v0, %v242_v1  ;;  %v39_v4 = vld [vmem:[%s348_s1 + $0x88] sm:$0xff]  ;;  %v41_v10 = vld [vmem:[%s348_s1 + $0x98] sm:$0xff] }
   0x3   :  { %v22_v5 = vld [vmem:[%s348_s1] sm:$0xff]  ;;  %v23_v6 = vld [vmem:[%s348_s1 + $0x8] sm:$0xff]  ;;  %v176_v7 = vpack.c.bf16 %v39_v4, %v38_v2  ;;  %v24_v11 = vld [vmem:[%s348_s1 + $0x10] sm:$0xff]  ;;  %v180_v12 = vpack.c.bf16 %v41_v10, %v40_v9 }
   0x4   :  { %v178_v8 = vpack.c.bf16 %v23_v6, %v22_v5  ;;  %14 = vmax.xlane.f32.xlu0 %v13_v3  ;;  %v25_v13 = vld [vmem:[%s348_s1 + $0x18] sm:$0xff]  ;;  %v42_v14 = vld [vmem:[%s348_s1 + $0xa0] sm:$0xff]  ;;  %v43_v15 = vld [vmem:[%s348_s1 + $0xa8] sm:$0xff] }
   0x5   :  { %177 = vmatprep.subr.bf16.mxu0 %v176_v7  ;;  %v182_v16 = vpack.c.bf16 %v25_v13, %v24_v11  ;;  %v184_v17 = vpack.c.bf16 %v43_v15, %v42_v14  ;;  %v26_v18 = vld [vmem:[%s348_s1 + $0x20] sm:$0xff]  ;;  %v27_v19 = vld [vmem:[%s348_s1 + $0x28] sm:$0xff]  ;;  %v44_v20 = vld [vmem:[%s348_s1 + $0xb0] sm:$0xff] }
   0x6   :  { %179 = vmatpush3.bf16.msra.mxu0 %v178_v8  ;;  %v45_v21 = vld [vmem:[%s348_s1 + $0xb8] sm:$0xff]  ;;  %v186_v22 = vpack.c.bf16 %v27_v19, %v26_v18  ;;  %v28_v24 = vld [vmem:[%s348_s1 + $0x30] sm:$0xff]  ;;  %v46_v27 = vld [vmem:[%s348_s1 + $0xc0] sm:$0xff] }
   0x7   :  { %181 = vmatprep.subr.bf16.mxu0 %v180_v12  ;;  %v188_v23 = vpack.c.bf16 %v45_v21, %v44_v20  ;;  %v29_v25 = vld [vmem:[%s348_s1 + $0x38] sm:$0xff]  ;;  %v47_v28 = vld [vmem:[%s348_s1 + $0xc8] sm:$0xff]  ;;  %v30_v30 = vld [vmem:[%s348_s1 + $0x40] sm:$0xff] }
   0x8   :  { %v190_v26 = vpack.c.bf16 %v29_v25, %v28_v24  ;;  %v192_v29 = vpack.c.bf16 %v47_v28, %v46_v27  ;;  %v31_v31 = vld [vmem:[%s348_s1 + $0x48] sm:$0xff]  ;;  %v48_v33 = vld [vmem:[%s348_s1 + $0xd0] sm:$0xff]  ;;  %v49_v34 = vld [vmem:[%s348_s1 + $0xd8] sm:$0xff] }
   0x9   :  { %v194_v32 = vpack.c.bf16 %v31_v31, %v30_v30  ;;  %v196_v35 = vpack.c.bf16 %v49_v34, %v48_v33  ;;  %v32_v36 = vld [vmem:[%s348_s1 + $0x50] sm:$0xff]  ;;  %v33_v37 = vld [vmem:[%s348_s1 + $0x58] sm:$0xff]  ;;  %v50_v39 = vld [vmem:[%s348_s1 + $0xe0] sm:$0xff] }
   0xa   :  { %183 = vmatpush3.bf16.msra.mxu0 %v182_v16  ;;  %v198_v38 = vpack.c.bf16 %v33_v37, %v32_v36  ;;  %v51_v40 = vld [vmem:[%s348_s1 + $0xe8] sm:$0xff]  ;;  %v34_v42 = vld [vmem:[%s348_s1 + $0x60] sm:$0xff]  ;;  %v52_v44 = vld [vmem:[%s348_s1 + $0xf0] sm:$0xff] }
   0xb   :  { %185 = vmatprep.subr.bf16.mxu0 %v184_v17  ;;  %v200_v41 = vpack.c.bf16 %v51_v40, %v50_v39  ;;  %v35_v43 = vld [vmem:[%s348_s1 + $0x68] sm:$0xff]  ;;  %v53_v45 = vld [vmem:[%s348_s1 + $0xf8] sm:$0xff]  ;;  %v36_v48 = vld [vmem:[%s348_s1 + $0x70] sm:$0xff] }
   0xc   :  { %v202_v46 = vpack.c.bf16 %v35_v43, %v34_v42  ;;  %v204_v47 = vpack.c.bf16 %v53_v45, %v52_v44  ;;  %v37_v49 = vld [vmem:[%s348_s1 + $0x78] sm:$0xff]  ;;  %s218_s1 = smov 127  }
   0xd   :  { %v206_v50 = vpack.c.bf16 %v37_v49, %v36_v48 }
   0xe   :  { %187 = vmatpush3.bf16.msra.mxu0 %v186_v22 }
   0xf   :  { %189 = vmatprep.subr.bf16.mxu0 %v188_v23 }
  0x12   :  { %191 = vmatpush3.bf16.msra.mxu0 %v190_v26 }
  0x13   :  { %193 = vmatprep.subr.bf16.mxu0 %v192_v29 }
  0x16   :  { %195 = vmatpush3.bf16.msra.mxu0 %v194_v32 }
  0x17   :  { %197 = vmatprep.subr.bf16.mxu0 %v196_v35 }
  0x1a   :  { %199 = vmatpush3.bf16.msra.mxu0 %v198_v38 }
  0x1b   :  { %201 = vmatprep.subr.bf16.mxu0 %v200_v41 }
  0x1e   :  { %203 = vmatpush3.bf16.msra.mxu0 %v202_v46 }
  0x1f   :  { %205 = vmatprep.subr.bf16.mxu0 %v204_v47 }
  0x22   :  { %207 = vmatpush3.bf16.msra.mxu0 %v206_v50 }
  0x91   :  { %v15_v51 = vpop.xlane.xlu0 %14 }
  0x92   :  { %v16_v52 = vsub.f32 %v237_v0, %v15_v51  ;;  %v17_v53 = vsub.f32 %v242_v1, %v15_v51 }
  0x94   :  { %v18_v54 = vmul.f32 1.442695, %v16_v52  ;;  %v20_v55 = vmul.f32 1.442695, %v17_v53 }
  0x96   :  { %211 = vpow2.f32 %v18_v54 }
  0x97   :  { %213 = vpow2.f32 %v20_v55 }
  0xa0   :  { %v212_v56 = vpop.eup %211 }
  0xa1   :  { %v214_v57 = vpop.eup %213 }
  0xa2   :  { %118 = vmatprep.mubr.f32.mxu0 %v214_v57 }
  0xa3   :  { %119 = vmatmul.mubr.f32.vlgmr.msra.gmra.mrb[0].mxu0 %v212_v56 }
 0x176   :  { %v173_v59 = vpop.f32.mrb[0].mxu0 }
 0x177   :  { %v174_v60 = vpop.f32.mrb[1].mxu0 }
 0x178   :  { %v175_v61 = vadd.f32 %v174_v60, %v173_v59 }
 0x17a   :  { %126 = vperm.xlu0 %210, %v175_v61  }
 0x1f9   :  { %v127_v62 = vpop.permute.xlu0 %126 }
 0x1fa   :  { %215 = vrcp.f32 %v127_v62 }
 0x204   :  { %v216_v63 = vpop.eup %215 }
 0x205   :  { %v130_v0 = vmul.f32 %v216_v63, %v175_v61 }
 0x207   :  { %132 = vrot.lane.b32.xlu1 %v130_v0, %s218_s1 }
 0x279   :  { %v133_v1 = vpop.permute.xlu1 %132 }
 0x27a   :  { %136 = vst.msk [vmem:[%s349_s2] sm:$0xff] %vm135_vm0, %v133_v1 }

</bundles_post_ra>
